<compile_context>
chip_gen: v7x
topology: tpu7x:2x2x1
jax: 0.10.0
libtpu: 0.0.40
codegen_flags: <defaults>
</compile_context>

<pallas_src>
import functools

import jax
import jax.numpy as jnp
from jax import lax
from jax.experimental import pallas as pl
from jax.experimental.pallas import tpu as pltpu


_SQRT1_2 = 0.7071067811865475


def _ffn_epilogue(x_self, message, w1a, w1b, b1, w2, b2, out_dtype):
    # cat([x, message], -1) @ W1^T + b1  ==  x @ W1a + message @ W1b + b1
    h = (jnp.dot(x_self, w1a, preferred_element_type=jnp.float32)
         + jnp.dot(message, w1b, preferred_element_type=jnp.float32)
         + b1)
    # Dropout is identity in eval mode. Exact-erf GELU (nn.GELU default).
    h = 0.5 * h * (1.0 + lax.erf(h * _SQRT1_2))
    return (jnp.dot(h, w2, preferred_element_type=jnp.float32) + b2).astype(out_dtype)


def _sage_kernel_fused(adj_t_ref, x_src_ref, x_dst_ref, inv_deg_ref,
                       w1a_ref, w1b_ref, b1_ref, w2_ref, b2_ref,
                       o_ref, *, msg_dtype):
    """Single-pass variant: the whole source-node reduction is resident (tu == N)."""
    adj = adj_t_ref[...].astype(msg_dtype)                 # int8 0/1 -> bf16 (exact, VPU)
    xs = x_src_ref[...].astype(msg_dtype)                  # narrow (N, D) operand
    msg_sum = jnp.dot(adj, xs, preferred_element_type=jnp.float32)        # (tv, D) f32
    message = msg_sum * inv_deg_ref[...]                   # mean; 0 for isolated nodes
    o_ref[...] = _ffn_epilogue(x_dst_ref[...], message, w1a_ref[...], w1b_ref[...],
                               b1_ref[...], w2_ref[...], b2_ref[...], o_ref.dtype)


def _sage_kernel_tiled(adj_t_ref, x_src_ref, x_dst_ref, inv_deg_ref,
                       w1a_ref, w1b_ref, b1_ref, w2_ref, b2_ref,
                       o_ref, acc_ref, *, msg_dtype):
    """Tiled-reduction variant: grid = (N//tv, N//tu), source axis last ('arbitrary')."""
    u = pl.program_id(1)

    @pl.when(u == 0)
    def _():
        acc_ref[...] = jnp.zeros_like(acc_ref)

    # Partial neighbor-sum over this source-node tile (bf16 MXU path, f32 accumulate):
    #   acc[v, :] += sum_{u in tile} adj_t[v, u] * x[u, :]
    adj = adj_t_ref[...].astype(msg_dtype)
    xs = x_src_ref[...].astype(msg_dtype)
    acc_ref[...] += jnp.dot(adj, xs, preferred_element_type=jnp.float32)

    @pl.when(u == pl.num_programs(1) - 1)
    def _():
        message = acc_ref[...] * inv_deg_ref[...]
        o_ref[...] = _ffn_epilogue(x_dst_ref[...], message, w1a_ref[...], w1b_ref[...],
                                   b1_ref[...], w2_ref[...], b2_ref[...], o_ref.dtype)


def _largest_tile(n, cap, align):
    """Largest t <= cap with n % t == 0 and t % align == 0; falls back to n (full dim)."""
    cap = min(cap, n)
    if cap >= n:
        return n
    for t in range(cap - cap % align, 0, -align):
        if n % t == 0:
            return t
    return n


def sage_module_forward(adj_t_i8, x, inv_in_deg, w1, b1, w2, b2, *,
                        tv=None, tu=None, msg_dtype=jnp.bfloat16):
    """adj_t_i8: (N, N) int8 with adj_t[v, u] = 1 iff edge u->v; x: (N, D) f32;
    inv_in_deg: (N, 1) f32 (0 for isolated nodes); w1: (2D, H); b1: (1, H);
    w2: (H, D); b2: (1, D)."""
    N, D = x.shape
    H = w1.shape[1]
    assert adj_t_i8.shape == (N, N) and adj_t_i8.dtype == jnp.int8
    assert inv_in_deg.shape == (N, 1)
    assert w1.shape == (2 * D, H) and b1.shape == (1, H)
    assert w2.shape == (H, D) and b2.shape == (1, D)

    # --- Tile selection (perf review: big tiles; large tv kills x re-read traffic) -----
    if tu is None:
        # Source-node / reduction tile: as big as reasonably fits; 2048*tv int8 tiles stay
        # well under the scoped-VMEM defaults while making the adjacency DMAs efficient.
        tu = _largest_tile(N, 2048, 128)
    if tv is None:
        # Destination-node tile: large to amortize x_src re-reads (extra HBM traffic is
        # N^2*D*4/tv bytes), but keep >= 2 grid rows so the v7x megacore can split the
        # "parallel" axis.
        tv = _largest_tile(N, max(32, min(1024, N // 2)), 32) if N > 32 else N
    tv = min(tv, N)
    tu = min(tu, N)
    assert N % tv == 0 and N % tu == 0, "N must be divisible by the tile sizes"
    assert tv == N or tv % 32 == 0, "tv must be a multiple of 32 (int8 sublane tiling)"
    assert tu == N or tu % 128 == 0, "tu must be a multiple of 128 (lane tiling)"

    # Split W1 so cat([x, message]) @ W1 needs no in-kernel concatenate.
    w1a = w1[:D]   # acts on self features
    w1b = w1[D:]   # acts on the mean message

    # --- VMEM budget: only raise the scoped limit when the tiles actually need it ------
    adj_tile = tv * tu                                         # int8 bytes per adj tile
    est = (2 * adj_tile + 2 * adj_tile                         # DMA double-buffer + bf16 temp
           + 2 * (tu * D + 2 * tv * D) * 4 + tv * D * 4        # x_src, x_dst, out, accumulator
           + 4 * (2 * D * H + H + H * D + D) * 4)              # pinned params (double-buffered)
    vmem_limit = min(int(est * 1.5), 48 * 1024 * 1024) if est > 14 * 1024 * 1024 else None

    if tu == N:
        # Whole reduction resident: 1-D grid, no accumulator, no pl.when phases.
        grid = (N // tv,)
        dim_sem = ("parallel",)
        kernel = functools.partial(_sage_kernel_fused, msg_dtype=msg_dtype)
        in_specs = [
            pl.BlockSpec((tv, N), lambda v: (v, 0)),     # adj_t tile (int8)
            pl.BlockSpec((N, D), lambda v: (0, 0)),      # x (all source rows, pinned)
            pl.BlockSpec((tv, D), lambda v: (v, 0)),     # x (dest/self rows)
            pl.BlockSpec((tv, 1), lambda v: (v, 0)),     # 1 / in_degree
            pl.BlockSpec((D, H), lambda v: (0, 0)),      # w1a
            pl.BlockSpec((D, H), lambda v: (0, 0)),      # w1b
            pl.BlockSpec((1, H), lambda v: (0, 0)),      # b1
            pl.BlockSpec((H, D), lambda v: (0, 0)),      # w2
            pl.BlockSpec((1, D), lambda v: (0, 0)),      # b2
        ]
        out_specs = pl.BlockSpec((tv, D), lambda v: (v, 0))
        scratch = []
    else:
        grid = (N // tv, N // tu)
        dim_sem = ("parallel", "arbitrary")
        kernel = functools.partial(_sage_kernel_tiled, msg_dtype=msg_dtype)
        in_specs = [
            pl.BlockSpec((tv, tu), lambda v, u: (v, u)),   # adj_t tile (int8)
            pl.BlockSpec((tu, D), lambda v, u: (u, 0)),    # x (source rows)
            pl.BlockSpec((tv, D), lambda v, u: (v, 0)),    # x (dest/self rows)
            pl.BlockSpec((tv, 1), lambda v, u: (v, 0)),    # 1 / in_degree
            pl.BlockSpec((D, H), lambda v, u: (0, 0)),     # w1a
            pl.BlockSpec((D, H), lambda v, u: (0, 0)),     # w1b
            pl.BlockSpec((1, H), lambda v, u: (0, 0)),     # b1
            pl.BlockSpec((H, D), lambda v, u: (0, 0)),     # w2
            pl.BlockSpec((1, D), lambda v, u: (0, 0)),     # b2
        ]
        out_specs = pl.BlockSpec((tv, D), lambda v, u: (v, 0))
        scratch = [pltpu.VMEM((tv, D), jnp.float32)]

    return pl.pallas_call(
        kernel,
        out_shape=jax.ShapeDtypeStruct((N, D), x.dtype),
        grid_spec=pltpu.PrefetchScalarGridSpec(
            num_scalar_prefetch=0,
            grid=grid,
            in_specs=in_specs,
            out_specs=out_specs,
            scratch_shapes=scratch,
        ),
        compiler_params=pltpu.CompilerParams(
            dimension_semantics=dim_sem,
            vmem_limit_bytes=vmem_limit),
    )(adj_t_i8, x, x, inv_in_deg, w1a, w1b, b1, w2, b2)


def _reference(adj, x, w1, b1, w2, b2, msg_x=None):
    """Pure-JAX SAGEModule forward (eval mode). `msg_x` lets the test model the kernel's
    bf16-rounded source features in the mean aggregation."""
    if msg_x is None:
        msg_x = x
    in_deg = adj.sum(axis=0).reshape(-1, 1)                     # (N, 1) in-degree of v
    msg_sum = adj.T @ msg_x
    msg = jnp.where(in_deg > 0, msg_sum / jnp.where(in_deg > 0, in_deg, 1.0), 0.0)
    xc = jnp.concatenate([x, msg], axis=1)
    h = xc @ w1 + b1
    h = 0.5 * h * (1.0 + lax.erf(h / jnp.sqrt(2.0)))
    return h @ w2 + b2


if __name__ == "__main__":
    # Module hyperparameters (SAGEModule: FFN input_dim_multiplier = 2)
    dim = 32
    hidden_dim_multiplier = 2
    hidden = dim * hidden_dim_multiplier        # 64
    N = 256                                     # graph nodes

    key = jax.random.PRNGKey(0)
    k_adj, k_x, k_w1, k_b1, k_w2, k_b2 = jax.random.split(key, 6)

    # Random directed graph: adj[u, v] = 1 iff edge u -> v
    adj = (jax.random.uniform(k_adj, (N, N)) < 0.1).astype(jnp.float32)

    # Node features
    x = jax.random.normal(k_x, (N, dim), dtype=jnp.float32)

    # Parameters (stored transposed vs torch: x @ w == x @ W^T). nn.Linear-style init.
    in_dim = 2 * dim
    bnd1 = 1.0 / (in_dim ** 0.5)
    w1 = jax.random.uniform(k_w1, (in_dim, hidden), minval=-bnd1, maxval=bnd1,
                            dtype=jnp.float32)
    b1 = jax.random.uniform(k_b1, (1, hidden), minval=-bnd1, maxval=bnd1,
                            dtype=jnp.float32)
    bnd2 = 1.0 / (hidden ** 0.5)
    w2 = jax.random.uniform(k_w2, (hidden, dim), minval=-bnd2, maxval=bnd2,
                            dtype=jnp.float32)
    b2 = jax.random.uniform(k_b2, (1, dim), minval=-bnd2, maxval=bnd2,
                            dtype=jnp.float32)

    # Wrapper-side precompute: destination-major int8 adjacency (half the HBM bytes of
    # bf16, 0/1 exact) + 1/in_degree so the mean is a cheap in-kernel row scale.
    adj_t = adj.T                                              # adj_t[v, u]
    in_deg = adj_t.sum(axis=1, keepdims=True)                  # (N, 1)
    inv_in_deg = jnp.where(in_deg > 0, 1.0 / in_deg, 0.0).astype(jnp.float32)
    adj_t_i8 = adj_t.astype(jnp.int8)

    out = sage_module_forward(adj_t_i8, x, inv_in_deg, w1, b1, w2, b2)
    out = jax.block_until_ready(out)
    assert out.shape == (N, dim)

    # Reference matching the kernel's numerics (bf16-rounded source features in the
    # message path only) -> tight tolerance.
    ref_bf16 = _reference(adj, x, w1, b1, w2, b2,
                          msg_x=x.astype(jnp.bfloat16).astype(jnp.float32))
    assert jnp.allclose(out, ref_bf16, atol=5e-4, rtol=5e-4), "mismatch vs bf16-msg reference"

    # Pure-f32 module semantics -> tolerance budget for the bf16 message aggregation
    # (<~2^-9 relative on the message term; see kernel header).
    ref_f32 = _reference(adj, x, w1, b1, w2, b2)
    assert jnp.allclose(out, ref_f32, atol=5e-3, rtol=5e-3), "mismatch vs f32 reference"

    print("KERNEL_OK")
</pallas_src>

<mosaic_0001>
module attributes {stable_mosaic.version = 11 : i64} {
  func.func @_sage_kernel_fused(%arg0: i32, %arg1: memref<128x256xi8, #tpu.memory_space<vmem>>, %arg2: memref<256x32xf32, #tpu.memory_space<vmem>>, %arg3: memref<128x32xf32, #tpu.memory_space<vmem>>, %arg4: memref<128x1xf32, #tpu.memory_space<vmem>>, %arg5: memref<32x64xf32, #tpu.memory_space<vmem>>, %arg6: memref<32x64xf32, #tpu.memory_space<vmem>>, %arg7: memref<1x64xf32, #tpu.memory_space<vmem>>, %arg8: memref<64x32xf32, #tpu.memory_space<vmem>>, %arg9: memref<1x32xf32, #tpu.memory_space<vmem>>, %arg10: memref<128x32xf32, #tpu.memory_space<vmem>>) attributes {dimension_semantics = [#tpu.dimension_semantics<parallel>], iteration_bounds = array<i64: 2>, scalar_prefetch = 0 : i64, scratch_operands = 0 : i64, tpu.core_type = #tpu.core_type<tc>, window_params = [{transform_indices = @transform_0, window_bounds = array<i64: 128, 256>}, {pipeline_mode = #tpu.pipeline_mode<synchronous>, transform_indices = @transform_1, window_bounds = array<i64: 256, 32>}, {transform_indices = @transform_2, window_bounds = array<i64: 128, 32>}, {transform_indices = @transform_3, window_bounds = array<i64: 128, 1>}, {pipeline_mode = #tpu.pipeline_mode<synchronous>, transform_indices = @transform_4, window_bounds = array<i64: 32, 64>}, {pipeline_mode = #tpu.pipeline_mode<synchronous>, transform_indices = @transform_5, window_bounds = array<i64: 32, 64>}, {pipeline_mode = #tpu.pipeline_mode<synchronous>, transform_indices = @transform_6, window_bounds = array<i64: 1, 64>}, {pipeline_mode = #tpu.pipeline_mode<synchronous>, transform_indices = @transform_7, window_bounds = array<i64: 64, 32>}, {pipeline_mode = #tpu.pipeline_mode<synchronous>, transform_indices = @transform_8, window_bounds = array<i64: 1, 32>}, {transform_indices = @transform_9, window_bounds = array<i64: 128, 32>}]} {
    %c0 = arith.constant 0 : index
    %c0_0 = arith.constant 0 : index
    %0 = vector.load %arg1[%c0, %c0_0] : memref<128x256xi8, #tpu.memory_space<vmem>>, vector<128x256xi8>
    %1 = arith.sitofp %0 : vector<128x256xi8> to vector<128x256xbf16>
    %c0_1 = arith.constant 0 : index
    %c0_2 = arith.constant 0 : index
    %2 = vector.load %arg2[%c0_1, %c0_2] : memref<256x32xf32, #tpu.memory_space<vmem>>, vector<256x32xf32>
    %3 = arith.truncf %2 : vector<256x32xf32> to vector<256x32xbf16>
    %cst = arith.constant dense<0.000000e+00> : vector<128x32xf32>
    %4 = tpu.matmul %1, %3, %cst {dimension_numbers = #tpu.dot_dimension_numbers<[1], [0], [0], [1], [0, 0, 1, 1], [], []>} : vector<128x256xbf16>, vector<256x32xbf16>, vector<128x32xf32> -> vector<128x32xf32>
    %c0_3 = arith.constant 0 : index
    %c0_4 = arith.constant 0 : index
    %5 = vector.load %arg4[%c0_3, %c0_4] : memref<128x1xf32, #tpu.memory_space<vmem>>, vector<128x1xf32>
    %6 = vector.broadcast %5 : vector<128x1xf32> to vector<128x32xf32>
    %7 = arith.mulf %4, %6 : vector<128x32xf32>
    %c0_5 = arith.constant 0 : index
    %c0_6 = arith.constant 0 : index
    %8 = vector.load %arg3[%c0_5, %c0_6] : memref<128x32xf32, #tpu.memory_space<vmem>>, vector<128x32xf32>
    %c0_7 = arith.constant 0 : index
    %c0_8 = arith.constant 0 : index
    %9 = vector.load %arg5[%c0_7, %c0_8] : memref<32x64xf32, #tpu.memory_space<vmem>>, vector<32x64xf32>
    %c0_9 = arith.constant 0 : index
    %c0_10 = arith.constant 0 : index
    %10 = vector.load %arg6[%c0_9, %c0_10] : memref<32x64xf32, #tpu.memory_space<vmem>>, vector<32x64xf32>
    %c0_11 = arith.constant 0 : index
    %c0_12 = arith.constant 0 : index
    %11 = vector.load %arg7[%c0_11, %c0_12] : memref<1x64xf32, #tpu.memory_space<vmem>>, vector<1x64xf32>
    %c0_13 = arith.constant 0 : index
    %c0_14 = arith.constant 0 : index
    %12 = vector.load %arg8[%c0_13, %c0_14] : memref<64x32xf32, #tpu.memory_space<vmem>>, vector<64x32xf32>
    %c0_15 = arith.constant 0 : index
    %c0_16 = arith.constant 0 : index
    %13 = vector.load %arg9[%c0_15, %c0_16] : memref<1x32xf32, #tpu.memory_space<vmem>>, vector<1x32xf32>
    %cst_17 = arith.constant dense<0.000000e+00> : vector<128x64xf32>
    %14 = tpu.matmul %8, %9, %cst_17 {dimension_numbers = #tpu.dot_dimension_numbers<[1], [0], [0], [1], [0, 0, 1, 1], [], []>} : vector<128x32xf32>, vector<32x64xf32>, vector<128x64xf32> -> vector<128x64xf32>
    %cst_18 = arith.constant dense<0.000000e+00> : vector<128x64xf32>
    %15 = tpu.matmul %7, %10, %cst_18 {dimension_numbers = #tpu.dot_dimension_numbers<[1], [0], [0], [1], [0, 0, 1, 1], [], []>} : vector<128x32xf32>, vector<32x64xf32>, vector<128x64xf32> -> vector<128x64xf32>
    %16 = arith.addf %14, %15 : vector<128x64xf32>
    %17 = vector.broadcast %11 : vector<1x64xf32> to vector<128x64xf32>
    %18 = arith.addf %16, %17 : vector<128x64xf32>
    %cst_19 = arith.constant 5.000000e-01 : f32
    %19 = vector.broadcast %cst_19 : f32 to vector<128x64xf32>
    %20 = arith.mulf %19, %18 : vector<128x64xf32>
    %cst_20 = arith.constant 0.707106769 : f32
    %21 = vector.broadcast %cst_20 : f32 to vector<128x64xf32>
    %22 = arith.mulf %18, %21 : vector<128x64xf32>
    %23 = math.erf %22 : vector<128x64xf32>
    %cst_21 = arith.constant 1.000000e+00 : f32
    %24 = vector.broadcast %cst_21 : f32 to vector<128x64xf32>
    %25 = arith.addf %24, %23 : vector<128x64xf32>
    %26 = arith.mulf %20, %25 : vector<128x64xf32>
    %cst_22 = arith.constant dense<0.000000e+00> : vector<128x32xf32>
    %27 = tpu.matmul %26, %12, %cst_22 {dimension_numbers = #tpu.dot_dimension_numbers<[1], [0], [0], [1], [0, 0, 1, 1], [], []>} : vector<128x64xf32>, vector<64x32xf32>, vector<128x32xf32> -> vector<128x32xf32>
    %28 = vector.broadcast %13 : vector<1x32xf32> to vector<128x32xf32>
    %29 = arith.addf %27, %28 : vector<128x32xf32>
    %c0_23 = arith.constant 0 : index
    %c0_24 = arith.constant 0 : index
    %30 = vector.load %arg10[%c0_23, %c0_24] : memref<128x32xf32, #tpu.memory_space<vmem>>, vector<128x32xf32>
    tpu.vector_store %arg10[%c0_23, %c0_24], %29 {strides = array<i32>} : memref<128x32xf32, #tpu.memory_space<vmem>>, vector<128x32xf32>,
    return
  }
  func.func @transform_0(%arg0: i32) -> (i32, i32) {
    %c0_i32 = arith.constant 0 : i32
    %c0_i32_0 = arith.constant 0 : i32
    return %arg0, %c0_i32 : i32, i32
  }
  func.func @transform_1(%arg0: i32) -> (i32, i32) {
    %c0_i32 = arith.constant 0 : i32
    %c0_i32_0 = arith.constant 0 : i32
    %c0_i32_1 = arith.constant 0 : i32
    return %c0_i32, %c0_i32_0 : i32, i32
  }
  func.func @transform_2(%arg0: i32) -> (i32, i32) {
    %c0_i32 = arith.constant 0 : i32
    %c0_i32_0 = arith.constant 0 : i32
    return %arg0, %c0_i32 : i32, i32
  }
  func.func @transform_3(%arg0: i32) -> (i32, i32) {
    %c0_i32 = arith.constant 0 : i32
    %c0_i32_0 = arith.constant 0 : i32
    return %arg0, %c0_i32 : i32, i32
  }
  func.func @transform_4(%arg0: i32) -> (i32, i32) {
    %c0_i32 = arith.constant 0 : i32
    %c0_i32_0 = arith.constant 0 : i32
    %c0_i32_1 = arith.constant 0 : i32
    return %c0_i32, %c0_i32_0 : i32, i32
  }
  func.func @transform_5(%arg0: i32) -> (i32, i32) {
    %c0_i32 = arith.constant 0 : i32
    %c0_i32_0 = arith.constant 0 : i32
    %c0_i32_1 = arith.constant 0 : i32
    return %c0_i32, %c0_i32_0 : i32, i32
  }
  func.func @transform_6(%arg0: i32) -> (i32, i32) {
    %c0_i32 = arith.constant 0 : i32
    %c0_i32_0 = arith.constant 0 : i32
    %c0_i32_1 = arith.constant 0 : i32
    return %c0_i32, %c0_i32_0 : i32, i32
  }
  func.func @transform_7(%arg0: i32) -> (i32, i32) {
    %c0_i32 = arith.constant 0 : i32
    %c0_i32_0 = arith.constant 0 : i32
    %c0_i32_1 = arith.constant 0 : i32
    return %c0_i32, %c0_i32_0 : i32, i32
  }
  func.func @transform_8(%arg0: i32) -> (i32, i32) {
    %c0_i32 = arith.constant 0 : i32
    %c0_i32_0 = arith.constant 0 : i32
    %c0_i32_1 = arith.constant 0 : i32
    return %c0_i32, %c0_i32_0 : i32, i32
  }
  func.func @transform_9(%arg0: i32) -> (i32, i32) {
    %c0_i32 = arith.constant 0 : i32
    %c0_i32_0 = arith.constant 0 : i32
    return %arg0, %c0_i32 : i32, i32
  }
}

</mosaic_0001>

<bundles_post_ra>
// kernel: tpu_custom_call.1
= control target key start
LH: loop header
LB: loop body
LE: loop exit
PB: predicated region body
PF: predicated region fallthrough
CT: control target
= control target key end

     0   :  { %s1937_s30 = smov 0   ;;  %s2306_s0 = inlined_call_operand.vmem [shape: s8[256,256], index: 0, kind: input, shape index: {}]   ;;  %s2307_s1 = inlined_call_operand.vmem [shape: f32[256,32], index: 1, kind: input, shape index: {}]   ;;  %s2308_s2 = inlined_call_operand.vmem [shape: f32[256,32], index: 2, kind: input, shape index: {}]   ;;  %s2309_s3 = inlined_call_operand.vmem [shape: f32[256,1], index: 3, kind: input, shape index: {}]   ;;  %s2310_s4 = inlined_call_operand.vmem [shape: f32[32,64], index: 4, kind: input, shape index: {}]   ;;  %s2311_s5 = inlined_call_operand.vmem [shape: f32[32,64], index: 5, kind: input, shape index: {}]   ;;  %s2312_s6 = inlined_call_operand.vmem [shape: f32[1,64], index: 6, kind: input, shape index: {}]   ;;  %s2313_s7 = inlined_call_operand.vmem [shape: f32[64,32], index: 7, kind: input, shape index: {}]   ;;  %s2314_s8 = inlined_call_operand.vmem [shape: f32[1,32], index: 8, kind: input, shape index: {}]   ;;  %s2315_s9 = inlined_call_operand.vmem [shape: f32[256,32], index: 9, kind: output, shape index: {}]  }
   0x1 LB: > { %s1484_s10 = sadd.s32 4294967295, %s1884_s30   ;;  %p1488_p0 = scmp.ge.s32.totalorder %s1884_s30, 1  ;;  %s1884_s30 = sphi %s1937_s30, %s19_s30  }
   0x2   : > { %p311_p1 = scmp.lt.s32.totalorder %s1884_s30, 3 }
   0x4   : > { %p312_p2 = pnand %p1488_p0, %p311_p1 }
   0x5   : > { %v424_v0 = vld [vmem:[%s2307_s1 + $0x80] sm:$0xff] (!%p312_p2)  ;;  %v425_v1 = vld [vmem:[%s2307_s1 + $0x88] sm:$0xff] (!%p312_p2)  ;;  %s1489_s17 = sshll.u32 (!%p312_p2), %s1484_s10, 2  ;;  %s1492_s18 = sshll.u32 (!%p312_p2), %s1484_s10, 4  ;;  %v426_v5 = vld [vmem:[%s2307_s1 + $0x90] sm:$0xff] (!%p312_p2)  ;;  %v1886_v7 = vmov (!%p312_p2), 0  }
   0x6   : > { %315 = sbr.rel (%p312_p2) target bundleno = 798 (0x31e), region = 56  ;;  %v408_v2 = vld [vmem:[%s2307_s1] sm:$0xff] (!%p312_p2)  ;;  %v448_v3 = vpack.c.bf16 (!%p312_p2), %v425_v1, %v424_v0  ;;  %v409_v4 = vld [vmem:[%s2307_s1 + $0x8] sm:$0xff] (!%p312_p2)  ;;  %v427_v6 = vld [vmem:[%s2307_s1 + $0x98] sm:$0xff] (!%p312_p2)  ;;  %p359_p3 = scmp.lt.s32.totalorder (!%p312_p2), %s1489_s17, 7  ;;  %1844 = vset.pattern.permute.xlu0 (!%p312_p2), %v1886_v7  ;;  %1845 = vset.pattern.permute.xlu1 (!%p312_p2), %v1886_v7  ;;  %vm699_vm0 = vcmask (!%p312_p2), 261120  }
   0x7   : > { %p366_p4 = scmp.lt.s32.totalorder (!%p312_p2), %s1492_s18, 31  ;;  %v440_v8 = vpack.c.bf16 (!%p312_p2), %v409_v4, %v408_v2  ;;  %v449_v9 = vpack.c.bf16 (!%p312_p2), %v427_v6, %v426_v5  ;;  %v410_v10 = vld [vmem:[%s2307_s1 + $0x10] sm:$0xff] (!%p312_p2)  ;;  %v411_v11 = vld [vmem:[%s2307_s1 + $0x18] sm:$0xff] (!%p312_p2)  ;;  %v428_v12 = vld [vmem:[%s2307_s1 + $0xa0] sm:$0xff] (!%p312_p2)  ;;  %vm1194_vm1 = vcmask (!%p312_p2), 523264  }
   0x8   : > { %1551 = vmatprep.subr.bf16.mxu0 (!%p312_p2), %v448_v3  ;;  %v429_v13 = vld [vmem:[%s2307_s1 + $0xa8] sm:$0xff] (!%p312_p2)  ;;  %v441_v14 = vpack.c.bf16 (!%p312_p2), %v411_v11, %v410_v10  ;;  %v412_v16 = vld [vmem:[%s2307_s1 + $0x20] sm:$0xff] (!%p312_p2)  ;;  %v430_v18 = vld [vmem:[%s2307_s1 + $0xb0] sm:$0xff] (!%p312_p2) }
   0x9   : > { %1552 = vmatpush3.bf16.msra.mxu0 (!%p312_p2), %v440_v8  ;;  %v450_v15 = vpack.c.bf16 (!%p312_p2), %v429_v13, %v428_v12  ;;  %v413_v17 = vld [vmem:[%s2307_s1 + $0x28] sm:$0xff] (!%p312_p2)  ;;  %v431_v19 = vld [vmem:[%s2307_s1 + $0xb8] sm:$0xff] (!%p312_p2)  ;;  %v414_v22 = vld [vmem:[%s2307_s1 + $0x30] sm:$0xff] (!%p312_p2) }
   0xa   : > { %1553 = vmatprep.subr.bf16.mxu0 (!%p312_p2), %v449_v9  ;;  %v442_v20 = vpack.c.bf16 (!%p312_p2), %v413_v17, %v412_v16  ;;  %v451_v21 = vpack.c.bf16 (!%p312_p2), %v431_v19, %v430_v18  ;;  %v415_v23 = vld [vmem:[%s2307_s1 + $0x38] sm:$0xff] (!%p312_p2)  ;;  %v432_v24 = vld [vmem:[%s2307_s1 + $0xc0] sm:$0xff] (!%p312_p2)  ;;  %v433_v25 = vld [vmem:[%s2307_s1 + $0xc8] sm:$0xff] (!%p312_p2) }
   0xb   : > { %v443_v28 = vpack.c.bf16 (!%p312_p2), %v415_v23, %v414_v22  ;;  %v416_v29 = vld [vmem:[%s2307_s1 + $0x40] sm:$0xff] (!%p312_p2)  ;;  %v452_v30 = vpack.c.bf16 (!%p312_p2), %v433_v25, %v432_v24  ;;  %v417_v31 = vld [vmem:[%s2307_s1 + $0x48] sm:$0xff] (!%p312_p2)  ;;  %v434_v34 = vld [vmem:[%s2307_s1 + $0xd0] sm:$0xff] (!%p312_p2) }
   0xc   : > { %v435_v35 = vld [vmem:[%s2307_s1 + $0xd8] sm:$0xff] (!%p312_p2)  ;;  %v444_v38 = vpack.c.bf16 (!%p312_p2), %v417_v31, %v416_v29  ;;  %v418_v40 = vld [vmem:[%s2307_s1 + $0x50] sm:$0xff] (!%p312_p2)  ;;  %v436_v42 = vld [vmem:[%s2307_s1 + $0xe0] sm:$0xff] (!%p312_p2) }
   0xd   : > { %s2317_s17 = smov (!%p359_p3, %s1489_s17), 7  ;;  %s2319_s18 = smov (!%p366_p4, %s1492_s18), 31  ;;  %1554 = vmatpush3.bf16.msra.mxu0 %v441_v14  ;;  %v453_v39 = vpack.c.bf16 %v435_v35, %v434_v34  ;;  %v419_v41 = vld [vmem:[%s2307_s1 + $0x58] sm:$0xff]  ;;  %v437_v43 = vld [vmem:[%s2307_s1 + $0xe8] sm:$0xff]  ;;  %v420_v48 = vld [vmem:[%s2307_s1 + $0x60] sm:$0xff] }
   0xe   : > { %s1550_s19 = sshll.u32 %s2317_s17, 4  ;;  %s1992_s27 = sshll.u32 %s2319_s18, 3  ;;  %1555 = vmatprep.subr.bf16.mxu0 %v450_v15  ;;  %v445_v46 = vpack.c.bf16 %v419_v41, %v418_v40  ;;  %v454_v47 = vpack.c.bf16 %v437_v43, %v436_v42  ;;  %v421_v49 = vld [vmem:[%s2307_s1 + $0x68] sm:$0xff]  ;;  %v438_v50 = vld [vmem:[%s2307_s1 + $0xf0] sm:$0xff]  ;;  %v439_v51 = vld [vmem:[%s2307_s1 + $0xf8] sm:$0xff] }
   0xf   : > { %s1990_s26 = scalar_lea.vmem %s2306_s0, %s1550_s19  ;;  %s2013_s16 = scalar_lea.vmem %s2309_s3, %s1992_s27  ;;  %v446_v54 = vpack.c.bf16 %v421_v49, %v420_v48  ;;  %v455_v55 = vpack.c.bf16 %v439_v51, %v438_v50  ;;  %v422_v56 = vld [vmem:[%s2307_s1 + $0x70] sm:$0xff]  ;;  %v423_v57 = vld [vmem:[%s2307_s1 + $0x78] sm:$0xff]  ;;  %v685_v25 = vld [vmem:[%s2311_s5] sm:$0xff] }
  0x10   : > { %v2007_v26 = vld [vmem:[%s1990_s26 + $0x8] sm:$0xff]  ;;  %v555_v32 = vld [vmem:[%s2013_s16 + $0x10] sm:$0xff]  ;;  %v557_v33 = vld [vmem:[%s2013_s16 + $0x20] sm:$0xff]  ;;  %v447_v60 = vpack.c.bf16 %v423_v57, %v422_v56  ;;  %s2143_s10 = scalar_lea.vmem %s2308_s2, %s1992_s27  ;;  %s2269_s13 = scalar_lea.vmem %s2315_s9, %s1992_s27 }
  0x11   : > { %v393_v27 = vunpack.c.l.s8.bf16 %v2007_v26  ;;  %1556 = vmatpush3.bf16.msra.mxu0 %v442_v20  ;;  %581 = vperm.xlu0 %1844, %v555_v32   ;;  %v556_v36 = vld [vmem:[%s2013_s16 + $0x18] sm:$0xff]  ;;  %v558_v37 = vld [vmem:[%s2013_s16 + $0x28] sm:$0xff]  ;;  %v559_v44 = vld [vmem:[%s2013_s16 + $0x30] sm:$0xff]  ;;  %v395_v1 = vunpack.c.h.s8.bf16 %v2007_v26 }
  0x12   : > { %1557 = vmatprep.subr.bf16.mxu0 %v451_v21  ;;  %591 = vperm.xlu1 %1845, %v557_v33   ;;  %v560_v45 = vld [vmem:[%s2013_s16 + $0x38] sm:$0xff]  ;;  %v561_v52 = vld [vmem:[%s2013_s16 + $0x40] sm:$0xff]  ;;  %v562_v53 = vld [vmem:[%s2013_s16 + $0x48] sm:$0xff] }
  0x13   : > { %488 = vmatprep.mubr.bf16.mxu0 %v393_v27  ;;  %v563_v58 = vld [vmem:[%s2013_s16 + $0x50] sm:$0xff]  ;;  %v564_v59 = vld [vmem:[%s2013_s16 + $0x58] sm:$0xff]  ;;  %v384_v61 = vld [vmem:[%s1990_s26] sm:$0xff] }
  0x14   : > { %v392_v62 = vunpack.c.l.s8.bf16 %v384_v61  ;;  %v565_v63 = vld [vmem:[%s2013_s16 + $0x60] sm:$0xff]  ;;  %v566_v0 = vld [vmem:[%s2013_s16 + $0x68] sm:$0xff]  ;;  %v567_v2 = vld [vmem:[%s2013_s16 + $0x70] sm:$0xff]  ;;  %v394_v5 = vunpack.c.h.s8.bf16 %v384_v61 }
  0x15   : > { %1558 = vmatpush3.bf16.msra.mxu0 %v443_v28  ;;  %586 = vperm.xlu0 %1844, %v556_v36   ;;  %v568_v3 = vld [vmem:[%s2013_s16 + $0x78] sm:$0xff]  ;;  %v553_v6 = vld [vmem:[%s2013_s16] sm:$0xff]  ;;  %v554_v7 = vld [vmem:[%s2013_s16 + $0x8] sm:$0xff] }
  0x16   : > { %1559 = vmatprep.subr.bf16.mxu0 %v452_v30  ;;  %596 = vperm.xlu1 %1845, %v558_v37   ;;  %v387_v4 = vld [vmem:[%s1990_s26 + $0x18] sm:$0xff]  ;;  %v386_v9 = vld [vmem:[%s1990_s26 + $0x10] sm:$0xff]  ;;  %v389_v12 = vld [vmem:[%s1990_s26 + $0x28] sm:$0xff] }
  0x17   : > { %v397_v8 = vunpack.c.l.s8.bf16 %v387_v4  ;;  %v396_v10 = vunpack.c.l.s8.bf16 %v386_v9  ;;  %v399_v11 = vunpack.c.h.s8.bf16 %v387_v4  ;;  %v398_v13 = vunpack.c.h.s8.bf16 %v386_v9  ;;  %v388_v15 = vld [vmem:[%s1990_s26 + $0x20] sm:$0xff]  ;;  %v391_v18 = vld [vmem:[%s1990_s26 + $0x38] sm:$0xff]  ;;  %v390_v21 = vld [vmem:[%s1990_s26 + $0x30] sm:$0xff] }
  0x18   : > { %v401_v14 = vunpack.c.l.s8.bf16 %v389_v12  ;;  %v400_v16 = vunpack.c.l.s8.bf16 %v388_v15  ;;  %v403_v17 = vunpack.c.h.s8.bf16 %v389_v12  ;;  %v402_v19 = vunpack.c.h.s8.bf16 %v388_v15  ;;  %v686_v26 = vld [vmem:[%s2311_s5 + $0x8] sm:$0xff]  ;;  %v687_v28 = vld [vmem:[%s2311_s5 + $0x10] sm:$0xff]  ;;  %v688_v29 = vld [vmem:[%s2311_s5 + $0x18] sm:$0xff] }
  0x19   : > { %1560 = vmatpush3.bf16.msra.mxu0 %v444_v38  ;;  %601 = vperm.xlu0 %1844, %v559_v44   ;;  %v405_v20 = vunpack.c.l.s8.bf16 %v391_v18  ;;  %v404_v22 = vunpack.c.l.s8.bf16 %v390_v21  ;;  %v407_v23 = vunpack.c.h.s8.bf16 %v391_v18  ;;  %v406_v24 = vunpack.c.h.s8.bf16 %v390_v21  ;;  %v681_v31 = vld [vmem:[%s2310_s4] sm:$0xff]  ;;  %v682_v32 = vld [vmem:[%s2310_s4 + $0x8] sm:$0xff] }
  0x1a   : > { %1561 = vmatprep.subr.bf16.mxu0 %v453_v39  ;;  %606 = vperm.xlu1 %1845, %v560_v45   ;;  %v1783_v27 = vpack.c.bf16 %v686_v26, %v685_v25  ;;  %v1787_v30 = vpack.c.bf16 %v688_v29, %v687_v28  ;;  %v1791_v33 = vpack.c.bf16 %v682_v32, %v681_v31 }
  0x1c   : > { %1815 = vmatprep.subr.bf16.mxu1 %v1783_v27 }
  0x1d   : > { %1562 = vmatpush3.bf16.msra.mxu0 %v445_v46  ;;  %611 = vperm.xlu0 %1844, %v561_v52  }
  0x1e   : > { %1563 = vmatprep.subr.bf16.mxu0 %v454_v47  ;;  %616 = vperm.xlu1 %1845, %v562_v53  }
  0x1f   : > { %1817 = vmatpush3.bf16.msra.mxu1 %v1783_v27 }
  0x20   : > { %1816 = vmatprep.subr.bf16.mxu1 %v1787_v30 }
  0x21   : > { %1564 = vmatpush3.bf16.msra.mxu0 %v446_v54  ;;  %621 = vperm.xlu0 %1844, %v563_v58  }
  0x22   : > { %1565 = vmatprep.subr.bf16.mxu0 %v455_v55  ;;  %626 = vperm.xlu1 %1845, %v564_v59  }
  0x23   : > { %1818 = vmatpush3.bf16.msra.mxu1 %v1787_v30 }
  0x24   : > { %1792 = vmatprep.subr.bf16.mxu1 %v1791_v33 }
  0x25   : > { %1566 = vmatpush3.bf16.msra.mxu0 %v447_v60  ;;  %631 = vperm.xlu0 %1844, %v565_v63   ;;  %v683_v63 = vld [vmem:[%s2310_s4 + $0x10] sm:$0xff] }
  0x26   : > { %636 = vperm.xlu1 %1845, %v566_v0   ;;  %1784 = vmatprep.subr.bf16.mxu0 %v1783_v27  ;;  %v684_v0 = vld [vmem:[%s2310_s4 + $0x18] sm:$0xff] }
  0x27   : > { %v1795_v4 = vpack.c.bf16 %v684_v0, %v683_v63  ;;  %v675_v63 = vld [vmem:[%s2143_s10 + $0x50] sm:$0xff]  ;;  %v676_v0 = vld [vmem:[%s2143_s10 + $0x58] sm:$0xff] }
  0x28   : > { %489 = vmatmul.mubr.bf16.vlgmr.msra.gmra.mrb[0].mxu0 %v392_v62 }
  0x29   : > { %496 = vmatprep.mubr.bf16.mxu0 %v395_v1  ;;  %641 = vperm.xlu0 %1844, %v567_v2  }
  0x2a   : > { %646 = vperm.xlu1 %1845, %v568_v3   ;;  %1786 = vmatpush3.bf16.msra.mxu0 %v1783_v27 }
  0x2b   : > { %1788 = vmatprep.subr.bf16.mxu0 %v1787_v30 }
  0x2d   : > { %571 = vperm.xlu0 %1844, %v553_v6  }
  0x2e   : > { %576 = vperm.xlu1 %1845, %v554_v7   ;;  %1790 = vmatpush3.bf16.msra.mxu0 %v1787_v30 }
  0x30   : > { %497 = vmatmul.mubr.bf16.gmra.mrb[4].mxu0 %v394_v5 }
  0x31   : > { %504 = vmatprep.mubr.bf16.mxu0 %v397_v8 }
  0x38   : > { %505 = vmatmul.mubr.bf16.gmra.mrb[8].mxu0 %v396_v10 }
  0x39   : > { %512 = vmatprep.mubr.bf16.mxu0 %v399_v11 }
  0x40   : > { %513 = vmatmul.mubr.bf16.gmra.mrb[12].mxu0 %v398_v13 }
  0x41   : > { %520 = vmatprep.mubr.bf16.mxu0 %v401_v14 }
  0x48   : > { %521 = vmatmul.mubr.bf16.gmra.mrb[16].mxu0 %v400_v16 }
  0x49   : > { %528 = vmatprep.mubr.bf16.mxu0 %v403_v17 }
  0x50   : > { %529 = vmatmul.mubr.bf16.gmra.mrb[20].mxu0 %v402_v19 }
  0x51   : > { %536 = vmatprep.mubr.bf16.mxu0 %v405_v20 }
  0x58   : > { %537 = vmatmul.mubr.bf16.gmra.mrb[24].mxu0 %v404_v22 }
  0x59   : > { %544 = vmatprep.mubr.bf16.mxu0 %v407_v23 }
  0x60   : > { %545 = vmatmul.mubr.bf16.gmra.mrb[28].mxu0 %v406_v24 }
  0x90   : > { %v582_v34 = vpop.permute.xlu0 %581 }
  0x91   : > { %v592_v35 = vpop.permute.xlu1 %591 }
  0x94   : > { %v587_v36 = vpop.permute.xlu0 %586 }
  0x95   : > { %v597_v37 = vpop.permute.xlu1 %596 }
  0x98   : > { %v602_v38 = vpop.permute.xlu0 %601 }
  0x99   : > { %v607_v39 = vpop.permute.xlu1 %606 }
  0x9c   : > { %v612_v40 = vpop.permute.xlu0 %611 }
  0x9d   : > { %v2100_v41 = vpop.permute.xlu1 %616 }
  0xa0   : > { %v2102_v42 = vpop.permute.xlu0 %621 }
  0xa1   : > { %v2104_v43 = vpop.permute.xlu1 %626 }
  0xa4   : > { %v2106_v44 = vpop.permute.xlu0 %631 }
  0xa5   : > { %v2108_v45 = vpop.permute.xlu1 %636 }
  0xa8   : > { %v2110_v46 = vpop.permute.xlu0 %641 }
  0xa9   : > { %v2112_v47 = vpop.permute.xlu1 %646 }
  0xac   : > { %v572_v50 = vpop.permute.xlu0 %571 }
  0xad   : > { %v577_v54 = vpop.permute.xlu1 %576 }
  0xfb   : > { %v1567_v48 = vpop.f32.mrb[0].mxu0 }
  0xfc   : > { %v1568_v49 = vpop.f32.mrb[1].mxu0 }
  0xfd   : > { %v1569_v51 = vadd.f32 %v1568_v49, %v1567_v48  ;;  %v1570_v52 = vpop.f32.mrb[2].mxu0 }
  0xfe   : > { %v1571_v53 = vpop.f32.mrb[3].mxu0 }
  0xff   : > { %v649_v55 = vmul.f32 %v1569_v51, %v572_v50  ;;  %v1572_v56 = vadd.f32 %v1571_v53, %v1570_v52 }
 0x101   : > { %v650_v57 = vmul.f32 %v1572_v56, %v577_v54  ;;  %1687 = vmatprep.mubr.msk.f32.mxu0 %vm699_vm0, %v649_v55  ;;  %v665_v55 = vld [vmem:[%s2143_s10] sm:$0xff]  ;;  %v666_v56 = vld [vmem:[%s2143_s10 + $0x8] sm:$0xff] }
 0x103   : > { %v1573_v58 = vpop.f32.mrb[4].mxu0  ;;  %1688 = vmatmul.mubr.msk.f32.vlgmr.msra.gmra.mrb[32].mxu0 %vm699_vm0, %v650_v57  ;;  %v667_v57 = vld [vmem:[%s2143_s10 + $0x10] sm:$0xff] }
 0x104   : > { %v1574_v59 = vpop.f32.mrb[5].mxu0 }
 0x105   : > { %v1575_v60 = vadd.f32 %v1574_v59, %v1573_v58  ;;  %v1576_v61 = vpop.f32.mrb[6].mxu0  ;;  %v670_v58 = vld [vmem:[%s2143_s10 + $0x28] sm:$0xff]  ;;  %v671_v59 = vld [vmem:[%s2143_s10 + $0x30] sm:$0xff] }
 0x106   : > { %v1577_v62 = vpop.f32.mrb[7].mxu0 }
 0x107   : > { %v1578_v1 = vadd.f32 %v1577_v62, %v1576_v61  ;;  %v651_v2 = vmul.f32 %v1575_v60, %v582_v34  ;;  %v672_v60 = vld [vmem:[%s2143_s10 + $0x38] sm:$0xff]  ;;  %v673_v61 = vld [vmem:[%s2143_s10 + $0x40] sm:$0xff]  ;;  %v674_v62 = vld [vmem:[%s2143_s10 + $0x48] sm:$0xff] }
 0x109   : > { %v652_v3 = vmul.f32 %v1578_v1, %v587_v36  ;;  %1690 = vmatprep.mubr.msk.f32.mxu1 %vm699_vm0, %v651_v2  ;;  %v677_v1 = vld [vmem:[%s2143_s10 + $0x60] sm:$0xff]  ;;  %v678_v2 = vld [vmem:[%s2143_s10 + $0x68] sm:$0xff] }
 0x10b   : > { %v1579_v5 = vpop.f32.mrb[8].mxu0  ;;  %1691 = vmatmul.mubr.msk.f32.vlgmr.msra.gmra.mrb[0].mxu1 %vm699_vm0, %v652_v3  ;;  %v679_v3 = vld [vmem:[%s2143_s10 + $0x70] sm:$0xff] }
 0x10c   : > { %v1580_v6 = vpop.f32.mrb[9].mxu0  ;;  %1794 = vmatpush3.bf16.msra.mxu1 %v1791_v33 }
 0x10d   : > { %v1581_v7 = vadd.f32 %v1580_v6, %v1579_v5  ;;  %v1582_v8 = vpop.f32.mrb[10].mxu0  ;;  %1796 = vmatprep.subr.bf16.mxu1 %v1795_v4  ;;  %v691_v5 = vld [vmem:[%s2313_s7 + $0x8] sm:$0xff]  ;;  %v692_v6 = vld [vmem:[%s2313_s7 + $0x10] sm:$0xff] }
 0x10e   : > { %v1583_v9 = vpop.f32.mrb[11].mxu0 }
 0x10f   : > { %v653_v10 = vmul.f32 %v1581_v7, %v592_v35  ;;  %v1584_v11 = vadd.f32 %v1583_v9, %v1582_v8  ;;  %v680_v7 = vld [vmem:[%s2143_s10 + $0x78] sm:$0xff] }
 0x110   : > { %1798 = vmatpush3.bf16.msra.mxu1 %v1795_v4  ;;  %v690_v4 = vld [vmem:[%s2313_s7] sm:$0xff]  ;;  %v693_v9 = vld [vmem:[%s2313_s7 + $0x18] sm:$0xff] }
 0x111   : > { %v654_v12 = vmul.f32 %v1584_v11, %v597_v37  ;;  %1693 = vmatprep.mubr.msk.f32.mxu1 %vm699_vm0, %v653_v10  ;;  %v1799_v8 = vpack.c.bf16 %v691_v5, %v690_v4  ;;  %v1803_v10 = vpack.c.bf16 %v693_v9, %v692_v6  ;;  %v694_v11 = vld [vmem:[%s2313_s7 + $0x20] sm:$0xff] }
 0x113   : > { %v1585_v13 = vpop.f32.mrb[12].mxu0  ;;  %1694 = vmatmul.mubr.msk.f32.gmra.mrb[2].mxu1 %vm699_vm0, %v654_v12  ;;  %1800 = vmatprep.subr.bf16.mxu1 %v1799_v8  ;;  %v695_v12 = vld [vmem:[%s2313_s7 + $0x28] sm:$0xff] }
 0x114   : > { %v1586_v14 = vpop.f32.mrb[13].mxu0 }
 0x115   : > { %v1587_v15 = vadd.f32 %v1586_v14, %v1585_v13  ;;  %v1588_v16 = vpop.f32.mrb[14].mxu0  ;;  %v1807_v13 = vpack.c.bf16 %v695_v12, %v694_v11  ;;  %v696_v14 = vld [vmem:[%s2313_s7 + $0x30] sm:$0xff] }
 0x116   : > { %v1589_v17 = vpop.f32.mrb[15].mxu0 }
 0x117   : > { %v655_v18 = vmul.f32 %v1587_v15, %v602_v38  ;;  %v1590_v19 = vadd.f32 %v1589_v17, %v1588_v16  ;;  %v697_v15 = vld [vmem:[%s2313_s7 + $0x38] sm:$0xff] }
 0x118   : > { %v1811_v16 = vpack.c.bf16 %v697_v15, %v696_v14 }
 0x119   : > { %v656_v20 = vmul.f32 %v1590_v19, %v607_v39  ;;  %1696 = vmatprep.mubr.msk.f32.mxu1 %vm699_vm0, %v655_v18  ;;  %v2208_v19 = vld [vmem:[%s2312_s6] ss:$0 sm:$0xff] }
 0x11b   : > { %v1591_v21 = vpop.f32.mrb[16].mxu0  ;;  %1697 = vmatmul.mubr.msk.f32.gmra.mrb[4].mxu1 %vm699_vm0, %v656_v20 }
 0x11c   : > { %v1592_v22 = vpop.f32.mrb[17].mxu0 }
 0x11d   : > { %v1593_v23 = vadd.f32 %v1592_v22, %v1591_v21  ;;  %v1594_v24 = vpop.f32.mrb[18].mxu0 }
 0x11e   : > { %v1595_v25 = vpop.f32.mrb[19].mxu0 }
 0x11f   : > { %v657_v26 = vmul.f32 %v1593_v23, %v612_v40  ;;  %v1596_v27 = vadd.f32 %v1595_v25, %v1594_v24 }
 0x121   : > { %v658_v28 = vmul.f32 %v1596_v27, %v2100_v41  ;;  %1699 = vmatprep.mubr.msk.f32.mxu1 %vm699_vm0, %v657_v26 }
 0x123   : > { %v1597_v29 = vpop.f32.mrb[20].mxu0  ;;  %1700 = vmatmul.mubr.msk.f32.gmra.mrb[6].mxu1 %vm699_vm0, %v658_v28 }
 0x124   : > { %v1598_v30 = vpop.f32.mrb[21].mxu0 }
 0x125   : > { %v1599_v31 = vadd.f32 %v1598_v30, %v1597_v29  ;;  %v1600_v32 = vpop.f32.mrb[22].mxu0 }
 0x126   : > { %v1601_v33 = vpop.f32.mrb[23].mxu0 }
 0x127   : > { %v659_v34 = vmul.f32 %v1599_v31, %v2102_v42  ;;  %v1602_v35 = vadd.f32 %v1601_v33, %v1600_v32 }
 0x129   : > { %v660_v36 = vmul.f32 %v1602_v35, %v2104_v43  ;;  %1702 = vmatprep.mubr.msk.f32.mxu1 %vm699_vm0, %v659_v34 }
 0x12b   : > { %v1603_v37 = vpop.f32.mrb[24].mxu0  ;;  %1703 = vmatmul.mubr.msk.f32.gmra.mrb[8].mxu1 %vm699_vm0, %v660_v36 }
 0x12c   : > { %v1604_v38 = vpop.f32.mrb[25].mxu0 }
 0x12d   : > { %v1605_v39 = vadd.f32 %v1604_v38, %v1603_v37  ;;  %v1606_v40 = vpop.f32.mrb[26].mxu0 }
 0x12e   : > { %v1607_v41 = vpop.f32.mrb[27].mxu0 }
 0x12f   : > { %v661_v48 = vmul.f32 %v1605_v39, %v2106_v44  ;;  %v1608_v49 = vadd.f32 %v1607_v41, %v1606_v40 }
 0x131   : > { %v662_v50 = vmul.f32 %v1608_v49, %v2108_v45  ;;  %1705 = vmatprep.mubr.msk.f32.mxu1 %vm699_vm0, %v661_v48 }
 0x133   : > { %v1609_v42 = vpop.f32.mrb[28].mxu0  ;;  %1706 = vmatmul.mubr.msk.f32.gmra.mrb[10].mxu1 %vm699_vm0, %v662_v50 }
 0x134   : > { %v1610_v43 = vpop.f32.mrb[29].mxu0 }
 0x135   : > { %v1611_v51 = vadd.f32 %v1610_v43, %v1609_v42  ;;  %v1612_v52 = vpop.f32.mrb[30].mxu0 }
 0x136   : > { %v1613_v53 = vpop.f32.mrb[31].mxu0 }
 0x137   : > { %v663_v44 = vmul.f32 %v1611_v51, %v2110_v46  ;;  %v1614_v45 = vadd.f32 %v1613_v53, %v1612_v52  ;;  %v668_v46 = vld [vmem:[%s2143_s10 + $0x18] sm:$0xff] }
 0x139   : > { %v664_v54 = vmul.f32 %v1614_v45, %v2112_v47  ;;  %1708 = vmatprep.mubr.msk.f32.mxu1 %vm699_vm0, %v663_v44  ;;  %v669_v47 = vld [vmem:[%s2143_s10 + $0x20] sm:$0xff] }
 0x13b   : > { %1709 = vmatmul.mubr.msk.f32.gmra.mrb[12].mxu1 %vm699_vm0, %v664_v54 }
 0x13c   : > { %1719 = vmatprep.mubr.msk.f32.mxu1 %vm699_vm0, %v665_v55 }
 0x13f   : > { %1720 = vmatmul.mubr.msk.f32.vlgmr.msra.gmra.mrb[14].mxu1 %vm699_vm0, %v666_v56 }
 0x140   : > { %1722 = vmatprep.mubr.msk.f32.mxu1 %vm699_vm0, %v667_v57  ;;  %1802 = vmatpush3.bf16.msra.mxu1 %v1799_v8 }
 0x141   : > { %1804 = vmatprep.subr.bf16.mxu1 %v1803_v10 }
 0x143   : > { %1723 = vmatmul.mubr.msk.f32.gmra.mrb[0].mxu1 %vm699_vm0, %v668_v46 }
 0x144   : > { %1725 = vmatprep.mubr.msk.f32.mxu1 %vm699_vm0, %v669_v47  ;;  %1806 = vmatpush3.bf16.msra.mxu1 %v1803_v10 }
 0x145   : > { %1808 = vmatprep.subr.bf16.mxu1 %v1807_v13 }
 0x147   : > { %1726 = vmatmul.mubr.msk.f32.gmra.mrb[2].mxu1 %vm699_vm0, %v670_v58 }
 0x148   : > { %1728 = vmatprep.mubr.msk.f32.mxu1 %vm699_vm0, %v671_v59  ;;  %1810 = vmatpush3.bf16.msra.mxu1 %v1807_v13 }
 0x149   : > { %1812 = vmatprep.subr.bf16.mxu1 %v1811_v16 }
 0x14b   : > { %1729 = vmatmul.mubr.msk.f32.gmra.mrb[4].mxu1 %vm699_vm0, %v672_v60 }
 0x14c   : > { %1731 = vmatprep.mubr.msk.f32.mxu1 %vm699_vm0, %v673_v61  ;;  %1814 = vmatpush3.bf16.msra.mxu1 %v1811_v16 }
 0x14f   : > { %1732 = vmatmul.mubr.msk.f32.gmra.mrb[6].mxu1 %vm699_vm0, %v674_v62 }
 0x150   : > { %1734 = vmatprep.mubr.msk.f32.mxu1 %vm699_vm0, %v675_v63 }
 0x153   : > { %1735 = vmatmul.mubr.msk.f32.gmra.mrb[8].mxu1 %vm699_vm0, %v676_v0 }
 0x154   : > { %1737 = vmatprep.mubr.msk.f32.mxu1 %vm699_vm0, %v677_v1 }
 0x157   : > { %1738 = vmatmul.mubr.msk.f32.gmra.mrb[10].mxu1 %vm699_vm0, %v678_v2 }
 0x158   : > { %1740 = vmatprep.mubr.msk.f32.mxu1 %vm699_vm0, %v679_v3 }
 0x15b   : > { %1741 = vmatmul.mubr.msk.f32.gmra.mrb[12].mxu1 %vm699_vm0, %v680_v7 }
 0x1d6   : > { %v1689_v17 = vpop.f32.mrb[32].mxu0 }
 0x1d7   : > { %v814_v18 = vpop.f32.mrb[33].mxu0 }
 0x212   : > { %v1721_v20 = vpop.f32.mrb[14].mxu1 }
 0x213   : > { %v1013_v21 = vadd.f32 %v1721_v20, %v1689_v17  ;;  %v1007_v22 = vpop.f32.mrb[15].mxu1 }
 0x214   : > { %v1008_v23 = vadd.f32 %v1007_v22, %v814_v18 }
 0x215   : > { %v1093_v24 = vadd.f32 %v2208_v19, %v1013_v21 }
 0x216   : > { %v1092_v25 = vadd.f32 %v2208_v19, %v1008_v23  ;;  %v1724_v26 = vpop.f32.mrb[0].mxu1 }
 0x217   : > { %v1125_v27 = vmul.f32 0.70710677, %v1093_v24  ;;  %v1095_v28 = vadd.f32 %v1724_v26, %v2208_v19  ;;  %v1017_v29 = vpop.f32.mrb[1].mxu1  ;;  %v1109_v58 = vmul.f32 0.5, %v1093_v24 }
 0x218   : > { %v1124_v30 = vmul.f32 0.70710677, %v1092_v25  ;;  %v1094_v31 = vadd.f32 %v2208_v19, %v1017_v29  ;;  %v1108_v56 = vmul.f32 0.5, %v1092_v25 }
 0x219   : > { %1846 = verf.f32 %v1125_v27  ;;  %v1127_v32 = vmul.f32 0.70710677, %v1095_v28  ;;  %v1111_v9 = vmul.f32 0.5, %v1095_v28 }
 0x21a   : > { %1848 = verf.f32 %v1124_v30  ;;  %v1126_v33 = vmul.f32 0.70710677, %v1094_v31  ;;  %v1727_v34 = vpop.f32.mrb[2].mxu1  ;;  %v1110_v59 = vmul.f32 0.5, %v1094_v31 }
 0x21b   : > { %1850 = verf.f32 %v1127_v32  ;;  %v2215_v35 = vadd.f32 %v1727_v34, %v2208_v19  ;;  %v1027_v36 = vpop.f32.mrb[3].mxu1 }
 0x21c   : > { %1852 = verf.f32 %v1126_v33  ;;  %v1096_v37 = vadd.f32 %v2208_v19, %v1027_v36 }
 0x21d   : > { %v1129_v38 = vmul.f32 0.70710677, %v2215_v35  ;;  %v1113_v24 = vmul.f32 0.5, %v2215_v35 }
 0x21e   : > { %v1128_v39 = vmul.f32 0.70710677, %v1096_v37  ;;  %v1730_v40 = vpop.f32.mrb[4].mxu1  ;;  %v1112_v12 = vmul.f32 0.5, %v1096_v37 }
 0x21f   : > { %1854 = verf.f32 %v1129_v38  ;;  %v2220_v41 = vadd.f32 %v1730_v40, %v2208_v19  ;;  %v1037_v48 = vpop.f32.mrb[5].mxu1 }
 0x220   : > { %1856 = verf.f32 %v1128_v39  ;;  %v1098_v49 = vadd.f32 %v2208_v19, %v1037_v48 }
 0x221   : > { %v1131_v50 = vmul.f32 0.70710677, %v2220_v41  ;;  %v1115_v38 = vmul.f32 0.5, %v2220_v41 }
 0x222   : > { %v1130_v42 = vmul.f32 0.70710677, %v1098_v49  ;;  %v1733_v43 = vpop.f32.mrb[6].mxu1  ;;  %v1114_v27 = vmul.f32 0.5, %v1098_v49 }
 0x223   : > { %v1847_v51 = vpop.eup %1846  ;;  %1858 = verf.f32 %v1131_v50  ;;  %v2225_v52 = vadd.f32 %v1733_v43, %v2208_v19  ;;  %v1047_v53 = vpop.f32.mrb[7].mxu1 }
 0x224   : > { %v1849_v44 = vpop.eup %1848  ;;  %v1157_v45 = vadd.f32 1.0, %v1847_v51  ;;  %1860 = verf.f32 %v1130_v42  ;;  %v2228_v54 = vadd.f32 %v2208_v19, %v1047_v53 }
 0x225   : > { %v1851_v55 = vpop.eup %1850  ;;  %v1156_v57 = vadd.f32 1.0, %v1849_v44  ;;  %v1133_v46 = vmul.f32 0.70710677, %v2225_v52  ;;  %v1117_v51 = vmul.f32 0.5, %v2225_v52 }
 0x226   : > { %v1853_v47 = vpop.eup %1852  ;;  %v1132_v60 = vmul.f32 0.70710677, %v2228_v54  ;;  %v1736_v61 = vpop.f32.mrb[8].mxu1  ;;  %v1173_v2 = vmul.f32 %v1157_v45, %v1109_v58  ;;  %v1159_v3 = vadd.f32 1.0, %v1851_v55  ;;  %v1116_v40 = vmul.f32 0.5, %v2228_v54 }
 0x227   : > { %v1172_v62 = vmul.f32 %v1156_v57, %v1108_v56  ;;  %v1158_v63 = vadd.f32 1.0, %v1853_v47  ;;  %1862 = verf.f32 %v1133_v46  ;;  %v2233_v0 = vadd.f32 %v1736_v61, %v2208_v19  ;;  %v1057_v1 = vpop.f32.mrb[9].mxu1 }
 0x228   : > { %1864 = verf.f32 %v1132_v60  ;;  %v1102_v4 = vadd.f32 %v2208_v19, %v1057_v1  ;;  %v1175_v16 = vmul.f32 %v1159_v3, %v1111_v9 }
 0x229   : > { %v1855_v5 = vpop.eup %1854  ;;  %v1174_v6 = vmul.f32 %v1158_v63, %v1110_v59  ;;  %v1135_v7 = vmul.f32 0.70710677, %v2233_v0  ;;  %1759 = vmatprep.mubr.msk.f32.mxu1 %vm1194_vm1, %v1172_v62  ;;  %v1119_v57 = vmul.f32 0.5, %v2233_v0 }
 0x22a   : > { %v1857_v8 = vpop.eup %1856  ;;  %v1134_v10 = vmul.f32 0.70710677, %v1102_v4  ;;  %v1739_v11 = vpop.f32.mrb[10].mxu1  ;;  %1760 = vmatmul.mubr.msk.f32.vlgmr.msra.gmra.mrb[16].mxu1 %vm1194_vm1, %v1173_v2  ;;  %v1161_v17 = vadd.f32 1.0, %v1855_v5  ;;  %v1118_v41 = vmul.f32 0.5, %v1102_v4 }
 0x22b   : > { %v1160_v13 = vadd.f32 1.0, %v1857_v8  ;;  %1866 = verf.f32 %v1135_v7  ;;  %v1105_v14 = vadd.f32 %v1739_v11, %v2208_v19  ;;  %v1067_v15 = vpop.f32.mrb[11].mxu1  ;;  %1762 = vmatprep.mubr.msk.f32.mxu1 %vm1194_vm1, %v1174_v6  ;;  %v1531_v6 = vld [vmem:[%s2314_s8] ss:$0 sm:$0xff] }
 0x22c   : > { %1868 = verf.f32 %v1134_v10  ;;  %v1104_v18 = vadd.f32 %v2208_v19, %v1067_v15  ;;  %v1177_v31 = vmul.f32 %v1161_v17, %v1113_v24 }
 0x22d   : > { %v1859_v20 = vpop.eup %1858  ;;  %v1176_v21 = vmul.f32 %v1160_v13, %v1112_v12  ;;  %v1137_v22 = vmul.f32 0.70710677, %v1105_v14  ;;  %v1121_v62 = vmul.f32 0.5, %v1105_v14 }
 0x22e   : > { %v1861_v23 = vpop.eup %1860  ;;  %v1136_v25 = vmul.f32 0.70710677, %v1104_v18  ;;  %v1742_v26 = vpop.f32.mrb[12].mxu1  ;;  %1763 = vmatmul.mubr.msk.f32.gmra.mrb[18].mxu1 %vm1194_vm1, %v1175_v16  ;;  %v1163_v32 = vadd.f32 1.0, %v1859_v20  ;;  %v1120_v46 = vmul.f32 0.5, %v1104_v18 }
 0x22f   : > { %v1162_v28 = vadd.f32 1.0, %v1861_v23  ;;  %1870 = verf.f32 %v1137_v22  ;;  %v1107_v29 = vadd.f32 %v1742_v26, %v2208_v19  ;;  %v1077_v30 = vpop.f32.mrb[13].mxu1  ;;  %1765 = vmatprep.mubr.msk.f32.mxu1 %vm1194_vm1, %v1176_v21 }
 0x230   : > { %1872 = verf.f32 %v1136_v25  ;;  %v1106_v33 = vadd.f32 %v2208_v19, %v1077_v30  ;;  %v1179_v49 = vmul.f32 %v1163_v32, %v1115_v38 }
 0x231   : > { %v1863_v34 = vpop.eup %1862  ;;  %v1178_v36 = vmul.f32 %v1162_v28, %v1114_v27  ;;  %v1139_v35 = vmul.f32 0.70710677, %v1107_v29  ;;  %v1123_v4 = vmul.f32 0.5, %v1107_v29 }
 0x232   : > { %v1865_v37 = vpop.eup %1864  ;;  %v1138_v39 = vmul.f32 0.70710677, %v1106_v33  ;;  %1766 = vmatmul.mubr.msk.f32.gmra.mrb[20].mxu1 %vm1194_vm1, %v1177_v31  ;;  %v1165_v50 = vadd.f32 1.0, %v1863_v34  ;;  %v1122_v63 = vmul.f32 0.5, %v1106_v33 }
 0x233   : > { %v1164_v48 = vadd.f32 1.0, %v1865_v37  ;;  %1874 = verf.f32 %v1139_v35  ;;  %1768 = vmatprep.mubr.msk.f32.mxu1 %vm1194_vm1, %v1178_v36 }
 0x234   : > { %1876 = verf.f32 %v1138_v39  ;;  %v1181_v44 = vmul.f32 %v1165_v50, %v1117_v51 }
 0x235   : > { %v1867_v42 = vpop.eup %1866  ;;  %v1180_v19 = vmul.f32 %v1164_v48, %v1116_v40 }
 0x236   : > { %v1869_v43 = vpop.eup %1868  ;;  %1769 = vmatmul.mubr.msk.f32.gmra.mrb[22].mxu1 %vm1194_vm1, %v1179_v49  ;;  %v1167_v45 = vadd.f32 1.0, %v1867_v42 }
 0x237   : > { %v1166_v53 = vadd.f32 1.0, %v1869_v43  ;;  %1771 = vmatprep.mubr.msk.f32.mxu1 %vm1194_vm1, %v1180_v19 }
 0x238   : > { %v1183_v52 = vmul.f32 %v1167_v45, %v1119_v57 }
 0x239   : > { %v1871_v54 = vpop.eup %1870  ;;  %v1182_v55 = vmul.f32 %v1166_v53, %v1118_v41 }
 0x23a   : > { %v1873_v56 = vpop.eup %1872  ;;  %1772 = vmatmul.mubr.msk.f32.gmra.mrb[24].mxu1 %vm1194_vm1, %v1181_v44  ;;  %v1169_v58 = vadd.f32 1.0, %v1871_v54 }
 0x23b   : > { %v1168_v47 = vadd.f32 1.0, %v1873_v56  ;;  %1774 = vmatprep.mubr.msk.f32.mxu1 %vm1194_vm1, %v1182_v55 }
 0x23c   : > { %v1185_v0 = vmul.f32 %v1169_v58, %v1121_v62 }
 0x23d   : > { %v1875_v59 = vpop.eup %1874  ;;  %v1184_v60 = vmul.f32 %v1168_v47, %v1120_v46 }
 0x23e   : > { %v1877_v61 = vpop.eup %1876  ;;  %1775 = vmatmul.mubr.msk.f32.gmra.mrb[26].mxu1 %vm1194_vm1, %v1183_v52  ;;  %v1171_v2 = vadd.f32 1.0, %v1875_v59 }
 0x23f   : > { %v1170_v1 = vadd.f32 1.0, %v1877_v61  ;;  %1777 = vmatprep.mubr.msk.f32.mxu1 %vm1194_vm1, %v1184_v60 }
 0x240   : > { %v1187_v5 = vmul.f32 %v1171_v2, %v1123_v4 }
 0x241   : > { %v1186_v3 = vmul.f32 %v1170_v1, %v1122_v63 }
 0x242   : > { %1778 = vmatmul.mubr.msk.f32.gmra.mrb[28].mxu1 %vm1194_vm1, %v1185_v0 }
 0x243   : > { %1780 = vmatprep.mubr.msk.f32.mxu1 %vm1194_vm1, %v1186_v3 }
 0x246   : > { %1781 = vmatmul.mubr.msk.f32.gmra.mrb[30].mxu1 %vm1194_vm1, %v1187_v5 }
 0x2fd   : > { %v1761_v7 = vpop.f32.mrb[16].mxu1 }
 0x2fe   : > { %v1315_v8 = vadd.f32 %v1761_v7, %v1531_v6  ;;  %v1309_v9 = vpop.f32.mrb[17].mxu1 }
 0x2ff   : > { %v1310_v10 = vadd.f32 %v1531_v6, %v1309_v9 }
 0x300   : > { %1389 = vst.msk [vmem:[%s2269_s13 + $0x8] sm:$0xff] %vm699_vm0, %v1315_v8 }
 0x301   : > { %1388 = vst.msk [vmem:[%s2269_s13] sm:$0xff] %vm699_vm0, %v1310_v10  ;;  %v1764_v11 = vpop.f32.mrb[18].mxu1 }
 0x302   : > { %v1325_v12 = vadd.f32 %v1764_v11, %v1531_v6  ;;  %v1319_v13 = vpop.f32.mrb[19].mxu1 }
 0x303   : > { %v1320_v14 = vadd.f32 %v1531_v6, %v1319_v13 }
 0x304   : > { %1391 = vst.msk [vmem:[%s2269_s13 + $0x18] sm:$0xff] %vm699_vm0, %v1325_v12 }
 0x305   : > { %1390 = vst.msk [vmem:[%s2269_s13 + $0x10] sm:$0xff] %vm699_vm0, %v1320_v14  ;;  %v1767_v15 = vpop.f32.mrb[20].mxu1 }
 0x306   : > { %v1335_v16 = vadd.f32 %v1767_v15, %v1531_v6  ;;  %v1329_v17 = vpop.f32.mrb[21].mxu1 }
 0x307   : > { %v1330_v18 = vadd.f32 %v1531_v6, %v1329_v17 }
 0x308   : > { %1393 = vst.msk [vmem:[%s2269_s13 + $0x28] sm:$0xff] %vm699_vm0, %v1335_v16 }
 0x309   : > { %1392 = vst.msk [vmem:[%s2269_s13 + $0x20] sm:$0xff] %vm699_vm0, %v1330_v18  ;;  %v1770_v20 = vpop.f32.mrb[22].mxu1 }
 0x30a   : > { %v1345_v21 = vadd.f32 %v1770_v20, %v1531_v6  ;;  %v1339_v22 = vpop.f32.mrb[23].mxu1 }
 0x30b   : > { %v1340_v23 = vadd.f32 %v1531_v6, %v1339_v22 }
 0x30c   : > { %1395 = vst.msk [vmem:[%s2269_s13 + $0x38] sm:$0xff] %vm699_vm0, %v1345_v21 }
 0x30d   : > { %1394 = vst.msk [vmem:[%s2269_s13 + $0x30] sm:$0xff] %vm699_vm0, %v1340_v23  ;;  %v1773_v24 = vpop.f32.mrb[24].mxu1 }
 0x30e   : > { %v1355_v25 = vadd.f32 %v1773_v24, %v1531_v6  ;;  %v1349_v26 = vpop.f32.mrb[25].mxu1 }
 0x30f   : > { %v1350_v27 = vadd.f32 %v1531_v6, %v1349_v26 }
 0x310   : > { %1397 = vst.msk [vmem:[%s2269_s13 + $0x48] sm:$0xff] %vm699_vm0, %v1355_v25 }
 0x311   : > { %1396 = vst.msk [vmem:[%s2269_s13 + $0x40] sm:$0xff] %vm699_vm0, %v1350_v27  ;;  %v1776_v28 = vpop.f32.mrb[26].mxu1 }
 0x312   : > { %v1365_v29 = vadd.f32 %v1776_v28, %v1531_v6  ;;  %v1359_v30 = vpop.f32.mrb[27].mxu1 }
 0x313   : > { %v1360_v31 = vadd.f32 %v1531_v6, %v1359_v30 }
 0x314   : > { %1399 = vst.msk [vmem:[%s2269_s13 + $0x58] sm:$0xff] %vm699_vm0, %v1365_v29 }
 0x315   : > { %1398 = vst.msk [vmem:[%s2269_s13 + $0x50] sm:$0xff] %vm699_vm0, %v1360_v31  ;;  %v1779_v32 = vpop.f32.mrb[28].mxu1 }
 0x316   : > { %v1375_v33 = vadd.f32 %v1779_v32, %v1531_v6  ;;  %v1369_v34 = vpop.f32.mrb[29].mxu1 }
 0x317   : > { %v1370_v36 = vadd.f32 %v1531_v6, %v1369_v34 }
 0x318   : > { %1401 = vst.msk [vmem:[%s2269_s13 + $0x68] sm:$0xff] %vm699_vm0, %v1375_v33 }
 0x319   : > { %1400 = vst.msk [vmem:[%s2269_s13 + $0x60] sm:$0xff] %vm699_vm0, %v1370_v36  ;;  %v1782_v35 = vpop.f32.mrb[30].mxu1 }
 0x31a   : > { %v1385_v37 = vadd.f32 %v1782_v35, %v1531_v6  ;;  %v1379_v38 = vpop.f32.mrb[31].mxu1 }
 0x31b   : > { %v1380_v39 = vadd.f32 %v1531_v6, %v1379_v38 }
 0x31c   : > { %1403 = vst.msk [vmem:[%s2269_s13 + $0x78] sm:$0xff] %vm699_vm0, %v1385_v37 }
 0x31d   : > { %1402 = vst.msk [vmem:[%s2269_s13 + $0x70] sm:$0xff] %vm699_vm0, %v1380_v39 }
 0x31e PF: > { %s19_s30 = sadd.s32 1, %s1884_s30  }
 0x31f   : > { %p16_p5 = scmp.ge.s32.totalorder %s19_s30, 4  }
 0x321   :  { %18 = sbr.rel (!%p16_p5) target bundleno = 1 (0x1), region = 92 }

</bundles_post_ra>
